<compile_context>
chip_gen: v5e
topology: v5e:2x2
jax: 0.10.0
libtpu: 0.0.40
codegen_flags: <defaults>
</compile_context>

<pallas_src>
import functools
import math

import jax
import jax.numpy as jnp
from jax.experimental import pallas as pl
from jax.experimental.pallas import tpu as pltpu


def _vmem_limit_bytes(est_bytes):
    # Explicit scoped-VMEM request derived from the chosen tiles, with
    # headroom, clamped to ~75% of physical VMEM so Mosaic keeps internal
    # scratch room on every generation (v7x has only 64 MiB / TC).
    try:
        cap = int(pltpu.get_tpu_info().vmem_capacity_bytes)
    except Exception:
        cap = 64 << 20
    hi = (cap * 3) // 4
    return int(min(max(2 * est_bytes + (4 << 20), 8 << 20), hi))


# ---------------------------------------------------------------------------
# Kernel 1: fused Q/K/V projection.
#   x  : [rows, H]   (rows = batch * seq, row-major flatten)
#   w3 : [H, 3H]     (Wq | Wk | Wv concatenated; y = x @ W + b == nn.Linear)
#   b3 : [1, 3H]     (f32)
# ---------------------------------------------------------------------------
def _qkv_kernel(x_ref, w_ref, b_ref, q_ref, k_ref, v_ref, *, hidden):
    # Single MXU matmul per row tile; native-dtype operands, f32 accumulation.
    y = jnp.dot(x_ref[...], w_ref[...], preferred_element_type=jnp.float32)
    y = y + b_ref[...].astype(jnp.float32)              # (1,3H) broadcast add
    q_ref[...] = y[:, :hidden].astype(q_ref.dtype)
    k_ref[...] = y[:, hidden:2 * hidden].astype(k_ref.dtype)
    v_ref[...] = y[:, 2 * hidden:].astype(v_ref.dtype)


def qkv_projection(x, w3, b3, *, tm=512):
    rows, hidden = x.shape

    # Row tile: multiple of 8; keep >= 4 grid steps when the problem allows so
    # the auto-pipeline overlaps DMA/compute and both v7x TCs get work.
    tm = min(tm, rows)
    if rows >= 32:
        tm = min(tm, max(8, (rows // 4) // 8 * 8))
    if tm != rows:
        tm = max(8, (tm // 8) * 8)
    grid = (pl.cdiv(rows, tm),)

    itemsize = jnp.dtype(x.dtype).itemsize
    est = (2 * tm * hidden * itemsize            # x tile (double-buffered)
           + 2 * hidden * 3 * hidden * itemsize  # fused weight (resident)
           + 2 * 3 * hidden * 4                  # bias (f32)
           + 3 * 2 * tm * hidden * itemsize      # q/k/v outputs (double-buffered)
           + tm * 3 * hidden * 4)                # f32 accumulator temp

    out_sds = jax.ShapeDtypeStruct((rows, hidden), x.dtype)
    row_spec = pl.BlockSpec((tm, hidden), lambda i: (i, 0))
    w_spec = pl.BlockSpec((hidden, 3 * hidden), lambda i: (0, 0))
    b_spec = pl.BlockSpec((1, 3 * hidden), lambda i: (0, 0))

    kernel = functools.partial(_qkv_kernel, hidden=hidden)
    return pl.pallas_call(
        kernel,
        out_shape=(out_sds, out_sds, out_sds),
        grid_spec=pltpu.PrefetchScalarGridSpec(
            num_scalar_prefetch=0,
            grid=grid,
            in_specs=[row_spec, w_spec, b_spec],
            out_specs=[row_spec, row_spec, row_spec],
        ),
        compiler_params=pltpu.CompilerParams(
            dimension_semantics=("parallel",),
            vmem_limit_bytes=_vmem_limit_bytes(est),
        ),
    )(x, w3, b3)


# ---------------------------------------------------------------------------
# Kernel 2: scaled-dot-product attention, operating on the [B, S, H] layout.
#   q/k/v : [B, S, H]   (head h = columns [h*Dh, (h+1)*Dh))
#   mask  : [B, 1, S]   (additive key-padding mask, f32)
#   grid  : (B, num_heads // hp, S // tq);  each step handles hp packed heads.
# ---------------------------------------------------------------------------
def _attention_kernel(q_ref, k_ref, v_ref, mask_ref, o_ref, *, scale, hp, dh):
    mask = mask_ref[0].astype(jnp.float32)       # (1, S) -> broadcasts over tq
    # Fold 1/sqrt(Dh) into q (tq x hp*Dh multiplies instead of tq x S).
    q_all = q_ref[0] * scale                     # native dtype (bf16 stays bf16)
    k_all = k_ref[0]
    v_all = v_ref[0]

    parts = []
    for h in range(hp):                          # static, unrolled per-head loop
        lo = h * dh
        q = q_all[:, lo:lo + dh]                 # (tq, Dh)
        k = k_all[:, lo:lo + dh]                 # (S,  Dh)
        v = v_all[:, lo:lo + dh]                 # (S,  Dh)
        # scores: native-dtype MXU operands, f32 accumulation.
        s = jax.lax.dot_general(q, k, (((1,), (1,)), ((), ())),
                                preferred_element_type=jnp.float32)
        s = s + mask
        # numerically-stable softmax over keys, normalization deferred.
        m = jnp.max(s, axis=-1, keepdims=True)
        p = jnp.exp(s - m)                       # (tq, S) f32, unnormalized
        l = jnp.sum(p, axis=-1, keepdims=True)   # (tq, 1)
        # TODO(synk): attention_probs dropout omitted (inference / p=0 path); a
        # stochastic mask via pltpu.prng_seed/prng_random_bits would go here.
        ctx = jnp.dot(p.astype(v.dtype), v, preferred_element_type=jnp.float32)
        parts.append(ctx * pl.reciprocal(l))     # scale tq x Dh, not tq x S
    out = parts[0] if hp == 1 else jnp.concatenate(parts, axis=-1)
    o_ref[0] = out.astype(o_ref.dtype)


def multi_head_attention(q, k, v, mask, *, num_heads, tq=256):
    b, s, h = q.shape
    dh = h // num_heads

    # Pack hp heads per grid step so the q/v/output block last dim is a
    # multiple of 128 lanes when possible (lane-dense stores, fewer steps).
    hp = num_heads
    for cand in range(1, num_heads + 1):
        if num_heads % cand == 0 and (cand * dh) % 128 == 0:
            hp = cand
            break
    g = num_heads // hp
    blk = hp * dh

    # Query tile: multiple of 8; if batch*head-groups alone can't feed >= 4
    # grid steps (v7x has 2 TCs), split the query axis further.
    tq = min(tq, s)
    if b * g < 4 and s >= 32:
        tq = min(tq, max(8, (s // 4) // 8 * 8))
    if tq != s:
        tq = max(8, (tq // 8) * 8)
    grid = (b, g, pl.cdiv(s, tq))

    itemsize = jnp.dtype(q.dtype).itemsize
    est = (2 * tq * blk * itemsize            # q tile
           + 2 * 2 * s * blk * itemsize       # k, v blocks (full seq, hp heads)
           + 2 * s * 4                        # mask row (f32)
           + 2 * tq * blk * itemsize          # output tile
           + (2 + hp) * tq * s * 4)           # in-kernel scores/probs temporaries

    kernel = functools.partial(_attention_kernel,
                               scale=1.0 / math.sqrt(dh), hp=hp, dh=dh)
    return pl.pallas_call(
        kernel,
        out_shape=jax.ShapeDtypeStruct((b, s, h), q.dtype),
        grid_spec=pltpu.PrefetchScalarGridSpec(
            num_scalar_prefetch=0,
            grid=grid,
            in_specs=[
                pl.BlockSpec((1, tq, blk), lambda bi, gi, qi: (bi, qi, gi)),
                pl.BlockSpec((1, s, blk), lambda bi, gi, qi: (bi, 0, gi)),
                pl.BlockSpec((1, s, blk), lambda bi, gi, qi: (bi, 0, gi)),
                pl.BlockSpec((1, 1, s), lambda bi, gi, qi: (bi, 0, 0)),
            ],
            out_specs=pl.BlockSpec((1, tq, blk), lambda bi, gi, qi: (bi, qi, gi)),
        ),
        compiler_params=pltpu.CompilerParams(
            dimension_semantics=("parallel", "parallel", "parallel"),
            vmem_limit_bytes=_vmem_limit_bytes(est),
        ),
    )(q, k, v, mask)


# ---------------------------------------------------------------------------
# Full BERTSelfAttention forward.
# ---------------------------------------------------------------------------
def bert_self_attention(hidden_states, attention_mask, params, *,
                        num_heads, tm=512, tq=256, compute_dtype=None):
    b, s, h = hidden_states.shape
    dtype = compute_dtype if compute_dtype is not None else hidden_states.dtype

    # Explicit compute-dtype casts (bf16 path: bf16 x / bf16 weights, f32 acc).
    x2 = hidden_states.reshape(b * s, h).astype(dtype)
    w3 = jnp.concatenate(
        [params["wq"], params["wk"], params["wv"]], axis=1).astype(dtype)
    b3 = jnp.concatenate(
        [params["bq"], params["bk"], params["bv"]]).reshape(1, 3 * h).astype(jnp.float32)

    q2, k2, v2 = qkv_projection(x2, w3, b3, tm=tm)

    # [B*S, H] -> [B, S, H] is a pure metadata reshape; heads stay on
    # contiguous column slices, so no transpose_for_scores HBM passes.
    q3 = q2.reshape(b, s, h)
    k3 = k2.reshape(b, s, h)
    v3 = v2.reshape(b, s, h)

    # Standard BERT extended key-padding mask [B,1,1,S] -> [B,1,S]; broadcast
    # over heads and query rows happens inside the kernel (no [B*NH,S,S]
    # materialization).
    # TODO(synk): general per-query [.., S, S] additive masks would need a
    # (1, tq, S) mask block instead of this key-padding fast path.
    mask3 = attention_mask.reshape(b, 1, s).astype(jnp.float32)

    ctx = multi_head_attention(q3, k3, v3, mask3, num_heads=num_heads, tq=tq)
    # Output is already [B, S, H] with heads merged in module order.
    return ctx.astype(hidden_states.dtype)


if __name__ == "__main__":
    batch, seq, hidden, num_heads = 2, 8, 32, 4
    head = hidden // num_heads

    key = jax.random.PRNGKey(0)
    ks = jax.random.split(key, 7)
    x = jax.random.normal(ks[0], (batch, seq, hidden), dtype=jnp.float32)
    wq = jax.random.normal(ks[1], (hidden, hidden), dtype=jnp.float32) * 0.02
    wk = jax.random.normal(ks[2], (hidden, hidden), dtype=jnp.float32) * 0.02
    wv = jax.random.normal(ks[3], (hidden, hidden), dtype=jnp.float32) * 0.02
    bq = jax.random.normal(ks[4], (hidden,), dtype=jnp.float32) * 0.02
    bk = jax.random.normal(ks[5], (hidden,), dtype=jnp.float32) * 0.02
    bv = jax.random.normal(ks[6], (hidden,), dtype=jnp.float32) * 0.02

    # Standard BERT "extended" attention mask: 0 for valid tokens, -1e4 for pad.
    valid_lens = jnp.array([seq, seq - 3], dtype=jnp.int32)
    valid = (jnp.arange(seq)[None, :] < valid_lens[:, None]).astype(jnp.float32)
    attention_mask = (1.0 - valid)[:, None, None, :] * -10000.0   # [B,1,1,S]

    params = dict(wq=wq, bq=bq, wk=wk, bk=bk, wv=wv, bv=bv)
    out = bert_self_attention(x, attention_mask, params, num_heads=num_heads)
    out = jax.block_until_ready(out)

    # Pure-JAX reference (same math as the PyTorch forward; dropout in eval).
    def ref_forward(x, mask):
        q = x @ wq + bq
        k = x @ wk + bk
        v = x @ wv + bv

        def split(t):
            return t.reshape(batch, seq, num_heads, head).transpose(0, 2, 1, 3)

        qh, kh, vh = split(q), split(k), split(v)
        s = jnp.einsum("bhqd,bhkd->bhqk", qh, kh) / math.sqrt(head)
        s = s + mask
        p = jax.nn.softmax(s, axis=-1)
        c = jnp.einsum("bhqk,bhkd->bhqd", p, vh)
        return c.transpose(0, 2, 1, 3).reshape(batch, seq, hidden)

    ref = ref_forward(x, attention_mask)
    err = float(jnp.max(jnp.abs(out - ref)))
    assert jnp.allclose(out, ref, atol=1e-5, rtol=1e-5), err

    print("KERNEL_OK")
</pallas_src>

<mosaic_0001>
module attributes {stable_mosaic.version = 11 : i64} {
  func.func @_qkv_kernel(%arg0: i32, %arg1: memref<16x32xf32, #tpu.memory_space<vmem>>, %arg2: memref<32x96xf32, #tpu.memory_space<vmem>>, %arg3: memref<1x96xf32, #tpu.memory_space<vmem>>, %arg4: memref<16x32xf32, #tpu.memory_space<vmem>>, %arg5: memref<16x32xf32, #tpu.memory_space<vmem>>, %arg6: memref<16x32xf32, #tpu.memory_space<vmem>>) attributes {dimension_semantics = [#tpu.dimension_semantics<parallel>], iteration_bounds = array<i64: 1>, scalar_prefetch = 0 : i64, scratch_operands = 0 : i64, tpu.core_type = #tpu.core_type<tc>, window_params = [{transform_indices = @transform_0, window_bounds = array<i64: 16, 32>}, {pipeline_mode = #tpu.pipeline_mode<synchronous>, transform_indices = @transform_1, window_bounds = array<i64: 32, 96>}, {pipeline_mode = #tpu.pipeline_mode<synchronous>, transform_indices = @transform_2, window_bounds = array<i64: 1, 96>}, {transform_indices = @transform_3, window_bounds = array<i64: 16, 32>}, {transform_indices = @transform_4, window_bounds = array<i64: 16, 32>}, {transform_indices = @transform_5, window_bounds = array<i64: 16, 32>}]} {
    %c0 = arith.constant 0 : index
    %c0_0 = arith.constant 0 : index
    %0 = vector.load %arg1[%c0, %c0_0] : memref<16x32xf32, #tpu.memory_space<vmem>>, vector<16x32xf32>
    %c0_1 = arith.constant 0 : index
    %c0_2 = arith.constant 0 : index
    %1 = vector.load %arg2[%c0_1, %c0_2] : memref<32x96xf32, #tpu.memory_space<vmem>>, vector<32x96xf32>
    %cst = arith.constant dense<0.000000e+00> : vector<16x96xf32>
    %2 = tpu.matmul %0, %1, %cst {dimension_numbers = #tpu.dot_dimension_numbers<[1], [0], [0], [1], [0, 0, 1, 1], [], []>} : vector<16x32xf32>, vector<32x96xf32>, vector<16x96xf32> -> vector<16x96xf32>
    %c0_3 = arith.constant 0 : index
    %c0_4 = arith.constant 0 : index
    %3 = vector.load %arg3[%c0_3, %c0_4] : memref<1x96xf32, #tpu.memory_space<vmem>>, vector<1x96xf32>
    %4 = vector.broadcast %3 : vector<1x96xf32> to vector<16x96xf32>
    %5 = arith.addf %2, %4 : vector<16x96xf32>
    %6 = vector.extract_strided_slice %5 {offsets = [0, 0], sizes = [16, 32], strides = [1, 1]} : vector<16x96xf32> to vector<16x32xf32>
    %c0_5 = arith.constant 0 : index
    %c0_6 = arith.constant 0 : index
    %7 = vector.load %arg4[%c0_5, %c0_6] : memref<16x32xf32, #tpu.memory_space<vmem>>, vector<16x32xf32>
    tpu.vector_store %arg4[%c0_5, %c0_6], %6 {strides = array<i32>} : memref<16x32xf32, #tpu.memory_space<vmem>>, vector<16x32xf32>,
    %8 = vector.extract_strided_slice %5 {offsets = [0, 32], sizes = [16, 32], strides = [1, 1]} : vector<16x96xf32> to vector<16x32xf32>
    %c0_7 = arith.constant 0 : index
    %c0_8 = arith.constant 0 : index
    %9 = vector.load %arg5[%c0_7, %c0_8] : memref<16x32xf32, #tpu.memory_space<vmem>>, vector<16x32xf32>
    tpu.vector_store %arg5[%c0_7, %c0_8], %8 {strides = array<i32>} : memref<16x32xf32, #tpu.memory_space<vmem>>, vector<16x32xf32>,
    %10 = vector.extract_strided_slice %5 {offsets = [0, 64], sizes = [16, 32], strides = [1, 1]} : vector<16x96xf32> to vector<16x32xf32>
    %c0_9 = arith.constant 0 : index
    %c0_10 = arith.constant 0 : index
    %11 = vector.load %arg6[%c0_9, %c0_10] : memref<16x32xf32, #tpu.memory_space<vmem>>, vector<16x32xf32>
    tpu.vector_store %arg6[%c0_9, %c0_10], %10 {strides = array<i32>} : memref<16x32xf32, #tpu.memory_space<vmem>>, vector<16x32xf32>,
    return
  }
  func.func @transform_0(%arg0: i32) -> (i32, i32) {
    %c0_i32 = arith.constant 0 : i32
    %c0_i32_0 = arith.constant 0 : i32
    return %arg0, %c0_i32 : i32, i32
  }
  func.func @transform_1(%arg0: i32) -> (i32, i32) {
    %c0_i32 = arith.constant 0 : i32
    %c0_i32_0 = arith.constant 0 : i32
    %c0_i32_1 = arith.constant 0 : i32
    return %c0_i32, %c0_i32_0 : i32, i32
  }
  func.func @transform_2(%arg0: i32) -> (i32, i32) {
    %c0_i32 = arith.constant 0 : i32
    %c0_i32_0 = arith.constant 0 : i32
    %c0_i32_1 = arith.constant 0 : i32
    return %c0_i32, %c0_i32_0 : i32, i32
  }
  func.func @transform_3(%arg0: i32) -> (i32, i32) {
    %c0_i32 = arith.constant 0 : i32
    %c0_i32_0 = arith.constant 0 : i32
    return %arg0, %c0_i32 : i32, i32
  }
  func.func @transform_4(%arg0: i32) -> (i32, i32) {
    %c0_i32 = arith.constant 0 : i32
    %c0_i32_0 = arith.constant 0 : i32
    return %arg0, %c0_i32 : i32, i32
  }
  func.func @transform_5(%arg0: i32) -> (i32, i32) {
    %c0_i32 = arith.constant 0 : i32
    %c0_i32_0 = arith.constant 0 : i32
    return %arg0, %c0_i32 : i32, i32
  }
}

</mosaic_0001>

<bundles_post_ra>
// kernel: tpu_custom_call.1
= control target key start
LH: loop header
LB: loop body
LE: loop exit
PB: predicated region body
PF: predicated region fallthrough
CT: control target
= control target key end

     0   :  { %11 = vsyncpa [#allocation3], 0  ;;  %s390_s0 = inlined_call_operand.hbm [shape: f32[16,32], index: 0, kind: input, shape index: {}]   ;;  %s391_s1 = inlined_call_operand.hbm [shape: f32[32,96], index: 1, kind: input, shape index: {}]   ;;  %s392_s2 = inlined_call_operand.vmem [shape: f32[1,96], index: 2, kind: input, shape index: {}]   ;;  %s393_s3 = inlined_call_operand.hbm [shape: f32[16,32], index: 3, kind: output, shape index: {0}]   ;;  %s394_s4 = inlined_call_operand.hbm [shape: f32[16,32], index: 4, kind: output, shape index: {1}]   ;;  %s395_s5 = inlined_call_operand.hbm [shape: f32[16,32], index: 5, kind: output, shape index: {2}]  }
   0x1   :  { %12 = vsyncpa [#allocation6], 0 }
   0x2   :  { %13 = vsyncpa [#allocation4], 0 }
   0x3   :  { %14 = vsyncpa [#allocation9], 0  ;;  %s19_s20 = sshll.u32 %s390_s0, 4  ;;  %s310_s21 = smov [#allocation2]   ;;  %s20_s20 = int_to_ptr.hbm [resolvable:$true] %s19_s20 }
   0x4   :  { %s21_s22 = sshll.u32 %s310_s21, 4  ;;  %s32_s25 = sshll.u32 %s391_s1, 4  ;;  %s22_s22 = int_to_ptr.vmem [resolvable:$true] %s21_s22  ;;  %s33_s25 = int_to_ptr.hbm [resolvable:$true] %s32_s25 }
   0x5   :  { %s311_s26 = smov 128   ;;  %s312_s27 = smov 8  }
   0x6   :  { %27 = dma.hbm_to_vmem [thread:$0]  %s20_s20, 256, %s22_s22, [#allocation3], %s311_s26, %s311_s26, %s312_s27  }
   0x7   :  { %s313_s28 = smov [#allocation5]  }
   0x8   :  { %s34_s29 = sshll.u32 %s313_s28, 4  ;;  %s35_s29 = int_to_ptr.vmem [resolvable:$true] %s34_s29 }
   0x9   :  { %40 = dma.hbm_to_vmem [thread:$0]  %s33_s25, 512, %s35_s29, [#allocation6], %s311_s26, %s311_s26, %s312_s27  }
   0xa   :  { %302 = dma.done.wait [#allocation3], 256  }
   0xb   :  { %303 = vsyncadd [#allocation3], 4294967040 }
   0xc   :  { %304 = dma.done.wait [#allocation6], 512  }
   0xd   :  { %305 = vsyncadd [#allocation6], 4294966784  ;;  %v56_v0 = vld [vmem:[#allocation5 + $0x18] sm:$0xff]  ;;  %v55_v1 = vld [vmem:[#allocation5 + $0x10] sm:$0xff]  ;;  %vm61_vm0 = vcmask 261120   ;;  %s117_s7 = sshll.u32 %s393_s3, 4  ;;  %s118_s7 = int_to_ptr.hbm [resolvable:$true] %s117_s7 }
   0xe   :  { %80 = vmatpush.msra.mxu0 %v56_v0  ;;  %168 = vmatpush.msra.mxu1 %v56_v0  ;;  %v54_v2 = vld [vmem:[#allocation5 + $0x8] sm:$0xff]  ;;  %v53_v3 = vld [vmem:[#allocation5] sm:$0xff]  ;;  %v51_v4 = vld [vmem:[#allocation2] sm:$0xff]  ;;  %s314_s8 = smov [#allocation7]   ;;  %s315_s10 = smov 64  }
   0xf   :  { %v52_v5 = vld [vmem:[#allocation2 + $0x8] sm:$0xff]  ;;  %v181_v6 = vld [vmem:[%s392_s2] ss:$0 sm:$0xff]  ;;  %s115_s9 = sshll.u32 %s314_s8, 4  ;;  %s316_s11 = smov 96   ;;  %s116_s9 = int_to_ptr.vmem [resolvable:$true] %s115_s9 }
  0x10   :  { %81 = vmatpush.msra.mxu0 %v55_v1  ;;  %169 = vmatpush.msra.mxu1 %v55_v1  ;;  %s317_s2 = smov [#allocation8]   ;;  %s130_s14 = sshll.u32 %s394_s4, 4  ;;  %s131_s14 = int_to_ptr.hbm [resolvable:$true] %s130_s14 }
  0x11   :  { %s128_s3 = sshll.u32 %s317_s2, 4  ;;  %s318_s15 = smov [#allocation10]   ;;  %s129_s3 = int_to_ptr.vmem [resolvable:$true] %s128_s3 }
  0x12   :  { %82 = vmatpush.msra.mxu0 %v54_v2  ;;  %170 = vmatpush.msra.mxu1 %v54_v2  ;;  %s141_s16 = sshll.u32 %s318_s15, 4  ;;  %s143_s19 = sshll.u32 %s395_s5, 4  ;;  %s142_s16 = int_to_ptr.vmem [resolvable:$true] %s141_s16  ;;  %s144_s19 = int_to_ptr.hbm [resolvable:$true] %s143_s19 }
  0x14   :  { %83 = vmatpush.msra.mxu0 %v53_v3  ;;  %171 = vmatpush.msra.mxu1 %v53_v3 }
  0x15   :  { %166 = vmatmul.msk.f32.vlgmr.msra.gmra.mxu0 %vm61_vm0, %v51_v4  ;;  %167 = vmatmul.msk.f32.vlgmr.msra.gmra.mxu1 %vm61_vm0, %v52_v5 }
  0x92   :  { %v85_v7 = vpop.f32.mrf.mxu0  ;;  %v88_v8 = vpop.f32.mrf.mxu1 }
  0x93   :  { %v86_v9 = vadd.f32 %v181_v6, %v85_v7  ;;  %v89_v10 = vadd.f32 %v181_v6, %v88_v8 }
  0x95   :  { %91 = vst.msk [vmem:[#allocation7] sm:$0xff] %vm61_vm0, %v86_v9  ;;  %103 = vrot.lane.b32.xlu1 %v86_v9, %s315_s10  ;;  %95 = vrot.lane.b32.xlu0 %v86_v9, %s316_s11 }
  0x96   :  { %92 = vst.msk [vmem:[#allocation7 + $0x8] sm:$0xff] %vm61_vm0, %v89_v10 }
  0x97   :  { %123 = dma.vmem_to_hbm [thread:$0]  %s116_s9, 256, %s118_s7, [#allocation4], %s311_s26, %s311_s26, %s312_s27  }
  0x9d   :  { %105 = vrot.lane.b32.xlu1 %v89_v10, %s315_s10  ;;  %97 = vrot.lane.b32.xlu0 %v89_v10, %s316_s11 }
 0x107   :  { %v104_v11 = vpop.permute.xlu1 %103  ;;  %v96_v12 = vpop.permute.xlu0 %95 }
 0x108   :  { %109 = vst.msk [vmem:[#allocation10] sm:$0xff] %vm61_vm0, %v104_v11 }
 0x109   :  { %101 = vst.msk [vmem:[#allocation8] sm:$0xff] %vm61_vm0, %v96_v12 }
 0x10f   :  { %v106_v13 = vpop.permute.xlu1 %105  ;;  %v98_v14 = vpop.permute.xlu0 %97 }
 0x110   :  { %110 = vst.msk [vmem:[#allocation10 + $0x8] sm:$0xff] %vm61_vm0, %v106_v13 }
 0x111   :  { %102 = vst.msk [vmem:[#allocation8 + $0x8] sm:$0xff] %vm61_vm0, %v98_v14 }
 0x112   :  { %136 = dma.vmem_to_hbm [thread:$0]  %s129_s3, 256, %s131_s14, [#allocation9], %s311_s26, %s311_s26, %s312_s27  }
 0x113   :  { %149 = dma.vmem_to_hbm [thread:$0]  %s142_s16, 256, %s144_s19, [#allocation9], %s311_s26, %s311_s26, %s312_s27  }
 0x114   :  { %306 = dma.done.wait [#allocation4], 256  }
 0x115   :  { %307 = vsyncadd [#allocation4], 4294967040 }
 0x116   :  { %308 = dma.done.wait [#allocation9], 512  }
 0x117   :  { %309 = vsyncadd [#allocation9], 4294966784 }
 0x118   :  { %162 = vsyncpa [#allocation3], 1 }
 0x119   :  { %163 = vsyncpa [#allocation6], 1 }
 0x11a   :  { %164 = vsyncpa [#allocation4], 1 }
 0x11b   :  { %165 = vsyncpa [#allocation9], 1 }

</bundles_post_ra>
